<compile_context>
chip_gen: v7x
topology: tpu7x:2x2x1
jax: 0.10.0
libtpu: 0.0.40
codegen_flags: <defaults>
</compile_context>

<pallas_src>
import jax
import jax.numpy as jnp
from jax.experimental import pallas as pl
from jax.experimental.pallas import tpu as pltpu


# ----------------------------------------------------------------------------
# Kernel
# ----------------------------------------------------------------------------
def _adaptive_rank_linear_kernel(x_ref, v_ref, uts_ref, b_ref, o_ref, t_ref):
    # Heavy dot (K = in_features): compute once per row tile, cache in VMEM
    # scratch, reuse for every output tile along grid axis 1.
    @pl.when(pl.program_id(1) == 0)
    def _():
        t_ref[...] = jnp.dot(
            x_ref[...].astype(v_ref.dtype), v_ref[...],
            preferred_element_type=jnp.float32)                  # (tm, rank)

    # Light dot (K = rank): singular values already folded into Ut host-side.
    y = jnp.dot(t_ref[...].astype(uts_ref.dtype), uts_ref[...],
                preferred_element_type=jnp.float32)              # (tm, tn)
    o_ref[...] = (y + b_ref[...].astype(jnp.float32)).astype(o_ref.dtype)


# ----------------------------------------------------------------------------
# Tiling helpers
# ----------------------------------------------------------------------------
def _round_up(x, m):
    return ((x + m - 1) // m) * m


def _pick_out_tile(n_pad):
    # Lane-dense output tile: a multiple of 128 when possible, else full dim.
    for cand in (512, 256, 128):
        if n_pad % cand == 0:
            return cand
    return n_pad


def _vmem_capacity_bytes():
    # Per-TensorCore VMEM (128 MiB on v5e/v6e, 64 MiB on v7x).  Fall back to
    # the smallest generation if the query is unavailable.
    try:
        info = pltpu.get_tpu_info()
        cap = getattr(info, "vmem_capacity_bytes", None)
        if cap:
            return int(cap)
    except Exception:
        pass
    return 64 * 1024 * 1024


# ----------------------------------------------------------------------------
# Wrapper
# ----------------------------------------------------------------------------
def adaptive_rank_linear(x, U, S, Vt, bias=None, *, compute_dtype=None,
                         tm=None, tn=None):
    """Adaptive low-rank linear layer via a Pallas TPU kernel.

    x:    (..., in_features)
    U:    (out_features, rank)
    S:    (rank,)
    Vt:   (rank, in_features)
    bias: (out_features,) or None
    compute_dtype: dtype fed to the MXU (e.g. jnp.bfloat16); default x.dtype.
    """
    orig_shape = x.shape
    in_features = orig_shape[-1]
    out_features, rank = U.shape

    compute_dtype = jnp.dtype(compute_dtype if compute_dtype is not None
                              else x.dtype)
    if bias is None:
        bias = jnp.zeros((out_features,), dtype=x.dtype)

    # Factor prep (once, HBM-side): transpose, fold S into Ut in f32, cast to
    # the MXU compute dtype.  The kernel never transposes or rescales.
    V = Vt.T.astype(compute_dtype)                                  # (in, r)
    Uts = (S[:, None].astype(jnp.float32)
           * U.T.astype(jnp.float32)).astype(compute_dtype)         # (r, out)
    b2d = bias.reshape(1, out_features).astype(x.dtype)

    x2d = x.reshape(-1, in_features)
    M = x2d.shape[0]

    # ---- output (lane) tiling: pad to a multiple of 128 only for big layers.
    N_pad = _round_up(out_features, 128) if out_features >= 128 else out_features
    if N_pad != out_features:
        Uts = jnp.pad(Uts, ((0, 0), (0, N_pad - out_features)))
        b2d = jnp.pad(b2d, ((0, 0), (0, N_pad - out_features)))
    if tn is None:
        tn = _pick_out_tile(N_pad)
    assert N_pad % tn == 0

    # ---- row tiling: budget-driven from this generation's VMEM capacity.
    xsz = jnp.dtype(x.dtype).itemsize
    csz = compute_dtype.itemsize
    vmem_cap = _vmem_capacity_bytes()
    budget = int(0.5 * (vmem_cap - 8 * 1024 * 1024))

    def _tm_for(tn_):
        fixed = (2 * in_features * rank * csz       # V (2 pipeline buffers)
                 + 2 * rank * tn_ * csz             # S.Ut tile
                 + 2 * tn_ * xsz)                   # bias tile
        per_row = (2 * in_features * xsz            # x tile
                   + 2 * tn_ * xsz                  # output tile
                   + rank * 4)                      # f32 t-cache scratch
        return max(8, ((budget - fixed) // per_row) // 8 * 8)

    if tm is None:
        tm_budget = _tm_for(tn)
        if tm_budget < 128 and tn > 128 and N_pad % 128 == 0:
            tn = 128                                # shrink tn before tm < 128
            tm_budget = _tm_for(tn)
        tm = min(512, tm_budget, _round_up(M, 8))
        # Megacore (v7x): give both TensorCores a row tile when there is work.
        if M >= 256 and _round_up(M, tm) // tm < 2:
            tm = _round_up((M + 1) // 2, 8)
    tm = max(8, _round_up(tm, 8))

    M_pad = _round_up(M, tm)
    if M_pad != M:
        x2d = jnp.pad(x2d, ((0, M_pad - M), (0, 0)))

    grid = (M_pad // tm, N_pad // tn)

    # Scoped-VMEM limit: generous margin over the estimated footprint, never
    # below 32 MiB (lifts v5e's 16 MiB default), never above chip capacity - 8 MiB.
    est_bytes = (2 * tm * in_features * xsz
                 + 2 * in_features * rank * csz
                 + 2 * rank * tn * csz
                 + 2 * tn * xsz
                 + 2 * tm * tn * xsz
                 + tm * rank * 4)
    vmem_limit = int(min(max(2 * est_bytes, 32 * 1024 * 1024),
                         vmem_cap - 8 * 1024 * 1024))

    out2d = pl.pallas_call(
        _adaptive_rank_linear_kernel,
        out_shape=jax.ShapeDtypeStruct((M_pad, N_pad), x.dtype),
        grid_spec=pltpu.PrefetchScalarGridSpec(
            num_scalar_prefetch=0,
            grid=grid,
            in_specs=[
                pl.BlockSpec((tm, in_features), lambda i, j: (i, 0)),    # x
                pl.BlockSpec((in_features, rank), lambda i, j: (0, 0)),  # V
                pl.BlockSpec((rank, tn), lambda i, j: (0, j)),           # S.Ut
                pl.BlockSpec((1, tn), lambda i, j: (0, j)),              # bias
            ],
            out_specs=pl.BlockSpec((tm, tn), lambda i, j: (i, j)),
            scratch_shapes=[pltpu.VMEM((tm, rank), jnp.float32)],        # t-cache
        ),
        compiler_params=pltpu.CompilerParams(
            dimension_semantics=("parallel", "arbitrary"),
            vmem_limit_bytes=vmem_limit,
        ),
    )(x2d, V, Uts, b2d)

    out2d = out2d[:M, :out_features]
    return out2d.reshape(*orig_shape[:-1], out_features)


# ----------------------------------------------------------------------------
# Demo / correctness check
# ----------------------------------------------------------------------------
if __name__ == "__main__":
    # Small shapes implied by the module: a linear layer on the last axis.
    batch, seq = 2, 8
    in_features, out_features, rank = 32, 32, 8

    key = jax.random.PRNGKey(0)
    kx, ku, ks, kvt, kb = jax.random.split(key, 5)

    # Deterministic synthetic parameters (shapes from __init__):
    #   U: (out, rank), S: (rank,), Vt: (rank, in), bias: (out,)
    x = jax.random.normal(kx, (batch, seq, in_features), dtype=jnp.float32)
    U = jax.random.normal(ku, (out_features, rank), dtype=jnp.float32) * 0.1
    S = jax.random.uniform(ks, (rank,), dtype=jnp.float32, minval=0.5, maxval=2.0)
    Vt = jax.random.normal(kvt, (rank, in_features), dtype=jnp.float32) * 0.1
    bias = jax.random.normal(kb, (out_features,), dtype=jnp.float32) * 0.1

    # Pure-JAX reference (same math as the PyTorch forward).
    W_ref = (U * S[None, :]) @ Vt
    y_ref = jnp.einsum("bsi,oi->bso", x, W_ref) + bias

    # f32 compute path: tight check.
    y = jax.block_until_ready(adaptive_rank_linear(x, U, S, Vt, bias))
    assert y.shape == (batch, seq, out_features)
    assert jnp.allclose(y, y_ref, rtol=1e-4, atol=1e-4), "f32 mismatch vs reference"

    # bf16 MXU path (factors cast host-side, x cast in-kernel): loose check.
    y_bf16 = jax.block_until_ready(
        adaptive_rank_linear(x, U, S, Vt, bias, compute_dtype=jnp.bfloat16))
    assert y_bf16.shape == (batch, seq, out_features)
    assert jnp.allclose(y_bf16, y_ref, rtol=5e-2, atol=5e-2), "bf16 mismatch vs reference"

    print("KERNEL_OK")
</pallas_src>

<mosaic_0001>
module attributes {stable_mosaic.version = 11 : i64} {
  func.func @_adaptive_rank_linear_kernel(%arg0: i32, %arg1: i32, %arg2: memref<16x32xf32, #tpu.memory_space<vmem>>, %arg3: memref<32x8xf32, #tpu.memory_space<vmem>>, %arg4: memref<8x32xf32, #tpu.memory_space<vmem>>, %arg5: memref<1x32xf32, #tpu.memory_space<vmem>>, %arg6: memref<16x32xf32, #tpu.memory_space<vmem>>, %arg7: memref<16x8xf32, #tpu.memory_space<vmem>>) attributes {dimension_semantics = [#tpu.dimension_semantics<parallel>, #tpu.dimension_semantics<arbitrary>], iteration_bounds = array<i64: 1, 1>, scalar_prefetch = 0 : i64, scratch_operands = 1 : i64, tpu.core_type = #tpu.core_type<tc>, window_params = [{transform_indices = @transform_0, window_bounds = array<i64: 16, 32>}, {pipeline_mode = #tpu.pipeline_mode<synchronous>, transform_indices = @transform_1, window_bounds = array<i64: 32, 8>}, {transform_indices = @transform_2, window_bounds = array<i64: 8, 32>}, {transform_indices = @transform_3, window_bounds = array<i64: 1, 32>}, {transform_indices = @transform_4, window_bounds = array<i64: 16, 32>}]} {
    %c0_i32 = arith.constant 0 : i32
    %0 = arith.cmpi eq, %arg1, %c0_i32 : i32
    %1 = arith.extui %0 : i1 to i32
    %c0_i32_0 = arith.constant 0 : i32
    %2 = arith.cmpi ne, %1, %c0_i32_0 : i32
    scf.if %2 {
      %c0_8 = arith.constant 0 : index
      %c0_9 = arith.constant 0 : index
      %10 = vector.load %arg2[%c0_8, %c0_9] : memref<16x32xf32, #tpu.memory_space<vmem>>, vector<16x32xf32>
      %c0_10 = arith.constant 0 : index
      %c0_11 = arith.constant 0 : index
      %11 = vector.load %arg3[%c0_10, %c0_11] : memref<32x8xf32, #tpu.memory_space<vmem>>, vector<32x8xf32>
      %cst_12 = arith.constant dense<0.000000e+00> : vector<16x8xf32>
      %12 = tpu.matmul %10, %11, %cst_12 {dimension_numbers = #tpu.dot_dimension_numbers<[1], [0], [0], [1], [0, 0, 1, 1], [], []>} : vector<16x32xf32>, vector<32x8xf32>, vector<16x8xf32> -> vector<16x8xf32>
      %c0_13 = arith.constant 0 : index
      %c0_14 = arith.constant 0 : index
      %13 = vector.load %arg7[%c0_13, %c0_14] : memref<16x8xf32, #tpu.memory_space<vmem>>, vector<16x8xf32>
      tpu.vector_store %arg7[%c0_13, %c0_14], %12 {strides = array<i32>} : memref<16x8xf32, #tpu.memory_space<vmem>>, vector<16x8xf32>,
    } else {
    }
    %c0 = arith.constant 0 : index
    %c0_1 = arith.constant 0 : index
    %3 = vector.load %arg7[%c0, %c0_1] : memref<16x8xf32, #tpu.memory_space<vmem>>, vector<16x8xf32>
    %c0_2 = arith.constant 0 : index
    %c0_3 = arith.constant 0 : index
    %4 = vector.load %arg4[%c0_2, %c0_3] : memref<8x32xf32, #tpu.memory_space<vmem>>, vector<8x32xf32>
    %cst = arith.constant dense<0.000000e+00> : vector<16x32xf32>
    %5 = tpu.matmul %3, %4, %cst {dimension_numbers = #tpu.dot_dimension_numbers<[1], [0], [0], [1], [0, 0, 1, 1], [], []>} : vector<16x8xf32>, vector<8x32xf32>, vector<16x32xf32> -> vector<16x32xf32>
    %c0_4 = arith.constant 0 : index
    %c0_5 = arith.constant 0 : index
    %6 = vector.load %arg5[%c0_4, %c0_5] : memref<1x32xf32, #tpu.memory_space<vmem>>, vector<1x32xf32>
    %7 = vector.broadcast %6 : vector<1x32xf32> to vector<16x32xf32>
    %8 = arith.addf %5, %7 : vector<16x32xf32>
    %c0_6 = arith.constant 0 : index
    %c0_7 = arith.constant 0 : index
    %9 = vector.load %arg6[%c0_6, %c0_7] : memref<16x32xf32, #tpu.memory_space<vmem>>, vector<16x32xf32>
    tpu.vector_store %arg6[%c0_6, %c0_7], %8 {strides = array<i32>} : memref<16x32xf32, #tpu.memory_space<vmem>>, vector<16x32xf32>,
    return
  }
  func.func @transform_0(%arg0: i32, %arg1: i32) -> (i32, i32) {
    %c0_i32 = arith.constant 0 : i32
    %c0_i32_0 = arith.constant 0 : i32
    return %arg0, %c0_i32 : i32, i32
  }
  func.func @transform_1(%arg0: i32, %arg1: i32) -> (i32, i32) {
    %c0_i32 = arith.constant 0 : i32
    %c0_i32_0 = arith.constant 0 : i32
    %c0_i32_1 = arith.constant 0 : i32
    return %c0_i32, %c0_i32_0 : i32, i32
  }
  func.func @transform_2(%arg0: i32, %arg1: i32) -> (i32, i32) {
    %c0_i32 = arith.constant 0 : i32
    %c0_i32_0 = arith.constant 0 : i32
    return %c0_i32, %arg1 : i32, i32
  }
  func.func @transform_3(%arg0: i32, %arg1: i32) -> (i32, i32) {
    %c0_i32 = arith.constant 0 : i32
    %c0_i32_0 = arith.constant 0 : i32
    return %c0_i32, %arg1 : i32, i32
  }
  func.func @transform_4(%arg0: i32, %arg1: i32) -> (i32, i32) {
    %c0_i32 = arith.constant 0 : i32
    return %arg0, %arg1 : i32, i32
  }
}

</mosaic_0001>

<bundles_post_ra>
// kernel: tpu_custom_call.1
= control target key start
LH: loop header
LB: loop body
LE: loop exit
PB: predicated region body
PF: predicated region fallthrough
CT: control target
= control target key end

     0   :  { %vm28_vm0 = vcmask 261120   ;;  %s357_s0 = inlined_call_operand.vmem [shape: f32[16,32], index: 0, kind: input, shape index: {}]   ;;  %s358_s1 = inlined_call_operand.vmem [shape: f32[32,8], index: 1, kind: input, shape index: {}]   ;;  %s359_s2 = inlined_call_operand.vmem [shape: f32[8,32], index: 2, kind: input, shape index: {}]   ;;  %s360_s3 = inlined_call_operand.vmem [shape: f32[1,32], index: 3, kind: input, shape index: {}]   ;;  %s361_s4 = inlined_call_operand.hbm [shape: f32[16,32], index: 4, kind: output, shape index: {}]  }
   0x1   :  { %v24_v0 = vld [vmem:[%s358_s1] sm:$0xff]  ;;  %v25_v1 = vld [vmem:[%s358_s1 + $0x8] sm:$0xff]  ;;  %v26_v2 = vld [vmem:[%s358_s1 + $0x10] sm:$0xff] }
   0x2   :  { %v254_v3 = vpack.c.bf16 %v25_v1, %v24_v0  ;;  %v27_v4 = vld [vmem:[%s358_s1 + $0x18] sm:$0xff]  ;;  %v22_v5 = vld [vmem:[%s357_s0] sm:$0xff] }
   0x3   :  { %v258_v6 = vpack.c.bf16 %v27_v4, %v26_v2  ;;  %246 = vmatprep.mubr.msk.f32.mxu0 %vm28_vm0, %v22_v5 }
   0x4   :  { %9 = vsyncpa [#allocation4], 0  ;;  %255 = vmatprep.subr.bf16.mxu0 %v254_v3  ;;  %v23_v7 = vld [vmem:[%s357_s0 + $0x8] sm:$0xff]  ;;  %v115_v8 = vld [vmem:[%s359_s2] sm:$0xff]  ;;  %vm110_vm1 = vcmask 64512   ;;  %s289_s0 = smov [#allocation3]  }
   0x5   :  { %257 = vmatpush3.bf16.msra.mxu0 %v254_v3  ;;  %249 = vmatprep.subr.mxu1 %v115_v8  ;;  %v226_v13 = vld [vmem:[%s360_s3] ss:$0 sm:$0xff]  ;;  %s213_s30 = sshll.u32 %s289_s0, 4  ;;  %s214_s30 = int_to_ptr.vmem [resolvable:$true] %s213_s30 }
   0x6   :  { %259 = vmatprep.subr.bf16.mxu0 %v258_v6  ;;  %250 = vmatpush3.msra.mxu1 %v115_v8  ;;  %s265_s2 = scalar_lea.vmem %s214_s30, 256  ;;  %p270_p1 = scmp.lt.s32.totalorder %s214_s30, %s214_s30 }
   0x7   :  { %p266_p0 = scmp.ne.s32.totalorder %s214_s30, %s265_s2  ;;  %p271_p2 = scmp.lt.s32.totalorder %s265_s2, %s265_s2 }
   0x9   :  { %261 = vmatpush3.bf16.msra.mxu0 %v258_v6  ;;  %p272_p3 = por %p271_p2, %p270_p1 }
   0xb   :  { %p273_p4 = pnand %p272_p3, %p266_p0 }
   0xc   :  { %247 = vmatmul.mubr.msk.f32.vlgmr.msra.gmra.mrb[0].mxu0 %vm28_vm0, %v23_v7 }
  0xdf   :  { %v248_v9 = vpop.f32.mrb[0].mxu0 }
  0xe0   :  { %112 = vst.msk [vmem:[#allocation2 + $0x8] sm:$0xff] %vm110_vm1, %v248_v9  ;;  %v101_v10 = vpop.f32.mrb[1].mxu0 }
  0xe1   :  { %111 = vst.msk [vmem:[#allocation2] sm:$0xff] %vm110_vm1, %v101_v10 }
  0xe7   :  { %v114_v12 = vld [vmem:[#allocation2 + $0x8] sm:$0xff] }
  0xe8   :  { %v113_v11 = vld [vmem:[#allocation2] sm:$0xff] }
  0xe9   :  { %251 = vmatprep.mubr.msk.f32.mxu1 %vm110_vm1, %v113_v11 }
  0xea   :  { %252 = vmatmul.mubr.msk.f32.vlgmr.msra.gmra.mrb[0].mxu1 %vm110_vm1, %v114_v12 }
 0x1bd   :  { %v253_v14 = vpop.f32.mrb[0].mxu1 }
 0x1be   :  { %v202_v15 = vadd.f32 %v253_v14, %v226_v13  ;;  %v196_v16 = vpop.f32.mrb[1].mxu1 }
 0x1bf   :  { %v197_v17 = vadd.f32 %v226_v13, %v196_v16 }
 0x1c0   :  { %207 = vst.msk [vmem:[#allocation3 + $0x8] sm:$0xff] %vm28_vm0, %v202_v15 }
 0x1c1   :  { %206 = vst.msk [vmem:[#allocation3] sm:$0xff] %vm28_vm0, %v197_v17 }
 0x1c2   :  { %276 = shalt.err (!%p273_p4)
}
 0x1c3   :  { %s277_s6 = scalar_lea.hbm %s361_s4, 256 }
 0x1c4   :  { %p278_p5 = scmp.ne.s32.totalorder %s361_s4, %s277_s6  ;;  %p281_p6 = scmp.lt.u32.totalorder %s277_s6, %s361_s4 }
 0x1c6   :  { %p283_p7 = pnand %p281_p6, %p278_p5 }
 0x1c8   :  { %286 = shalt.err (!%p283_p7)
}
 0x1c9   :  { %s290_s11 = smov 128   ;;  %s291_s12 = smov 8  }
 0x1ca   :  { %219 = dma.vmem_to_hbm [thread:$0]  %s214_s30, 256, %s361_s4, [#allocation4], %s290_s11, %s290_s11, %s291_s12  }
 0x1cb   :  { %287 = dma.done.wait [#allocation4], 256  }
 0x1cc   :  { %288 = vsyncadd [#allocation4], 4294967040 }
 0x1cd   :  { %223 = vsyncpa [#allocation4], 1 }

</bundles_post_ra>
